<compile_context>
chip_gen: v5e
topology: v5e:2x2
jax: 0.10.0
libtpu: 0.0.40
codegen_flags: <defaults>
</compile_context>

<pallas_src>
import functools

import jax
import jax.numpy as jnp
from jax import lax
from jax.experimental import pallas as pl
from jax.experimental.pallas import tpu as pltpu


# ---------------------------------------------------------------------------
# Pallas kernel: tiled (patches @ weights) with an f32 accumulator, fused
# BatchNorm bias (scale is pre-folded into the weights) + Swish epilogue.
# Grid = (M tiles, Cout tiles, K tiles); K is the contraction axis (last).
# ---------------------------------------------------------------------------
def _conv_bn_swish_kernel(p_ref, w_ref, b_ref, o_ref, acc_ref):
    @pl.when(pl.program_id(2) == 0)
    def _init():
        acc_ref[...] = jnp.zeros_like(acc_ref)

    acc_ref[...] += jnp.dot(p_ref[...], w_ref[...],
                            preferred_element_type=jnp.float32)

    @pl.when(pl.program_id(2) == pl.num_programs(2) - 1)
    def _finalize():
        y = acc_ref[...] + b_ref[...]          # BN scale already folded into W
        o_ref[...] = (y * jax.nn.sigmoid(y)).astype(o_ref.dtype)   # swish in f32


# ---------------------------------------------------------------------------
# Helpers
# ---------------------------------------------------------------------------
def _round_up(x, m):
    return ((x + m - 1) // m) * m


def _pick_row_tile(m):
    # Prefer big tiles (amortize ~0.35us/step) but keep >= 2 grid steps when
    # possible so both v7x TensorCores get work.
    for cand in (1024, 512, 256):
        if m >= 2 * cand:
            return cand
    return 128


def _pick_div_tile(padded_dim, prefer=512):
    for cand in (prefer, 256, 128):
        if padded_dim % cand == 0:
            return cand
    return 128   # padded_dim is always a multiple of 128


def _im2col_nhwc(x_nhwc, kernel_size, stride, dilate):
    """Extract conv patches: returns [N, Ho, Wo, KH*KW*Cin] with (ky, kx, cin) order."""
    n, h, w, cin = x_nhwc.shape
    pad = (kernel_size - 1) // 2 * dilate       # matches the PyTorch module
    xp = jnp.pad(x_nhwc, ((0, 0), (pad, pad), (pad, pad), (0, 0)))
    ho = (h + 2 * pad - dilate * (kernel_size - 1) - 1) // stride + 1
    wo = (w + 2 * pad - dilate * (kernel_size - 1) - 1) // stride + 1
    pieces = []
    for ky in range(kernel_size):
        for kx in range(kernel_size):
            y0 = ky * dilate
            x0 = kx * dilate
            sl = xp[:, y0:y0 + (ho - 1) * stride + 1:stride,
                    x0:x0 + (wo - 1) * stride + 1:stride, :]
            pieces.append(sl)
    return jnp.concatenate(pieces, axis=-1), ho, wo


# ---------------------------------------------------------------------------
# Public wrapper (NCHW in / NCHW out, matching the PyTorch module)
# ---------------------------------------------------------------------------
@functools.partial(
    jax.jit,
    static_argnames=("kernel_size", "stride", "dilate", "groups",
                     "compute_dtype", "out_dtype"))
def conv_block_forward(x_nchw, conv_w, gamma, beta, run_mean, run_var, *,
                       kernel_size, stride=1, dilate=1, groups=1, eps=1e-3,
                       compute_dtype=jnp.bfloat16, out_dtype=jnp.float32):
    """ConvBlock forward. x_nchw: [N, Cin, H, W], conv_w: [Cout, Cin, KH, KW].

    eps defaults to 1e-3 to match nn.BatchNorm2d(eps=0.001) in the module.
    """
    if groups != 1:
        raise NotImplementedError("Pallas ConvBlock supports groups == 1 only")
    dilate = 1 if stride > 1 else dilate
    n, cin, h, w = x_nchw.shape
    cout = conv_w.shape[0]

    # --- glue: layout + im2col + BN folding (f32) ---------------------------
    x_nhwc = jnp.transpose(x_nchw, (0, 2, 3, 1)).astype(jnp.float32)
    patches, ho, wo = _im2col_nhwc(x_nhwc, kernel_size, stride, dilate)
    m = n * ho * wo
    kd = kernel_size * kernel_size * cin
    patches = patches.reshape(m, kd)

    # OIHW -> (KH, KW, Cin, Cout) -> (KH*KW*Cin, Cout)  (matches patch order)
    w_mat = jnp.transpose(conv_w.astype(jnp.float32), (2, 3, 1, 0)).reshape(kd, cout)
    inv_std = lax.rsqrt(run_var.astype(jnp.float32) + eps)
    scale = gamma.astype(jnp.float32) * inv_std
    bias = beta.astype(jnp.float32) - run_mean.astype(jnp.float32) * scale
    w_mat = w_mat * scale[None, :]              # fold BN scale into the weights

    # --- pad to lane-dense / MXU-friendly shapes ----------------------------
    tm = _pick_row_tile(m)
    m_pad = _round_up(m, tm)
    kd_pad = _round_up(kd, 128)
    cout_pad = _round_up(cout, 128)
    tk = _pick_div_tile(kd_pad, prefer=512)
    tn = _pick_div_tile(cout_pad, prefer=512)

    patches = jnp.pad(patches, ((0, m_pad - m), (0, kd_pad - kd))).astype(compute_dtype)
    w_mat = jnp.pad(w_mat, ((0, kd_pad - kd), (0, cout_pad - cout))).astype(compute_dtype)
    bias = jnp.pad(bias, (0, cout_pad - cout)).reshape(1, cout_pad)  # stays f32

    grid = (m_pad // tm, cout_pad // tn, kd_pad // tk)

    # explicit VMEM budget (double-buffered inputs + out + accumulator)
    cbytes = jnp.dtype(compute_dtype).itemsize
    vmem_est = (2 * (tm * tk + tk * tn) * cbytes
                + 2 * tn * 4
                + 3 * tm * tn * 4)
    vmem_limit = int(min(60 * 1024 * 1024, max(32 * 1024 * 1024, 2 * vmem_est)))

    # --- Pallas hot path -----------------------------------------------------
    out_flat = pl.pallas_call(
        _conv_bn_swish_kernel,
        out_shape=jax.ShapeDtypeStruct((m_pad, cout_pad), out_dtype),
        grid_spec=pltpu.PrefetchScalarGridSpec(
            num_scalar_prefetch=0,
            grid=grid,
            in_specs=[
                pl.BlockSpec((tm, tk), lambda i, j, k: (i, k)),   # patches
                pl.BlockSpec((tk, tn), lambda i, j, k: (k, j)),   # folded weights
                pl.BlockSpec((1, tn), lambda i, j, k: (0, j)),    # BN bias
            ],
            out_specs=pl.BlockSpec((tm, tn), lambda i, j, k: (i, j)),
            scratch_shapes=[pltpu.VMEM((tm, tn), jnp.float32)],
        ),
        compiler_params=pltpu.CompilerParams(
            dimension_semantics=("parallel", "parallel", "arbitrary"),
            vmem_limit_bytes=vmem_limit),
    )(patches, w_mat, bias)

    # --- glue: strip padding, back to NCHW -----------------------------------
    out = out_flat[:m, :cout].reshape(n, ho, wo, cout)
    return jnp.transpose(out, (0, 3, 1, 2))


# ---------------------------------------------------------------------------
# Pure-JAX reference (lax conv + BN(eval) + swish)
# ---------------------------------------------------------------------------
def _reference(x_nchw, conv_w, gamma, beta, run_mean, run_var,
               kernel_size, stride=1, dilate=1, eps=1e-3):
    dilate = 1 if stride > 1 else dilate
    pad = (kernel_size - 1) // 2 * dilate
    y = lax.conv_general_dilated(
        x_nchw.astype(jnp.float32), conv_w.astype(jnp.float32),
        window_strides=(stride, stride),
        padding=((pad, pad), (pad, pad)),
        rhs_dilation=(dilate, dilate),
        dimension_numbers=("NCHW", "OIHW", "NCHW"))
    scale = (gamma / jnp.sqrt(run_var + eps)).reshape(1, -1, 1, 1)
    bias = (beta - run_mean * gamma / jnp.sqrt(run_var + eps)).reshape(1, -1, 1, 1)
    y = y * scale + bias
    return y * jax.nn.sigmoid(y)


if __name__ == "__main__":
    # ConvBlock(in_planes=4, out_planes=8, kernel_size=3, stride=1, groups=1, dilate=1)
    N, Cin, H, W = 2, 4, 16, 16
    Cout, K = 8, 3

    key = jax.random.PRNGKey(0)
    kx, kw, kg, kb, km, kv = jax.random.split(key, 6)

    x = jax.random.normal(kx, (N, Cin, H, W), dtype=jnp.float32)
    conv_w = jax.random.normal(kw, (Cout, Cin, K, K), dtype=jnp.float32) * 0.1
    gamma = jax.random.normal(kg, (Cout,), dtype=jnp.float32) * 0.1 + 1.0
    beta = jax.random.normal(kb, (Cout,), dtype=jnp.float32) * 0.1
    run_mean = jax.random.normal(km, (Cout,), dtype=jnp.float32) * 0.1
    run_var = jnp.abs(jax.random.normal(kv, (Cout,), dtype=jnp.float32)) * 0.5 + 0.5

    ref = _reference(x, conv_w, gamma, beta, run_mean, run_var, kernel_size=K)

    # f32 compute path: tight check of the fused math.
    out_f32 = conv_block_forward(x, conv_w, gamma, beta, run_mean, run_var,
                                 kernel_size=K, stride=1, dilate=1,
                                 compute_dtype=jnp.float32)
    out_f32 = jax.block_until_ready(out_f32)
    assert out_f32.shape == (N, Cout, H, W)
    assert jnp.allclose(out_f32, ref, atol=1e-4, rtol=1e-4), "f32 mismatch vs reference"

    # Default bf16 MXU path (f32 accumulation + f32 epilogue): looser tolerance.
    out_bf16 = conv_block_forward(x, conv_w, gamma, beta, run_mean, run_var,
                                  kernel_size=K, stride=1, dilate=1,
                                  compute_dtype=jnp.bfloat16)
    out_bf16 = jax.block_until_ready(out_bf16)
    assert out_bf16.shape == (N, Cout, H, W)
    assert jnp.allclose(out_bf16, ref, atol=5e-2, rtol=5e-2), "bf16 mismatch vs reference"

    print("KERNEL_OK")
</pallas_src>

<mosaic_0001>
module attributes {stable_mosaic.version = 11 : i64} {
  func.func @_conv_bn_swish_kernel(%arg0: i32, %arg1: i32, %arg2: i32, %arg3: memref<256x128xf32, #tpu.memory_space<vmem>>, %arg4: memref<128x128xf32, #tpu.memory_space<vmem>>, %arg5: memref<1x128xf32, #tpu.memory_space<vmem>>, %arg6: memref<256x128xf32, #tpu.memory_space<vmem>>, %arg7: memref<256x128xf32, #tpu.memory_space<vmem>>) attributes {dimension_semantics = [#tpu.dimension_semantics<parallel>, #tpu.dimension_semantics<parallel>, #tpu.dimension_semantics<arbitrary>], iteration_bounds = array<i64: 2, 1, 1>, scalar_prefetch = 0 : i64, scratch_operands = 1 : i64, tpu.core_type = #tpu.core_type<tc>, window_params = [{transform_indices = @transform_0, window_bounds = array<i64: 256, 128>}, {transform_indices = @transform_1, window_bounds = array<i64: 128, 128>}, {transform_indices = @transform_2, window_bounds = array<i64: 1, 128>}, {transform_indices = @transform_3, window_bounds = array<i64: 256, 128>}]} {
    %c0_i32 = arith.constant 0 : i32
    %0 = arith.cmpi eq, %arg2, %c0_i32 : i32
    %1 = arith.extui %0 : i1 to i32
    %c0_i32_0 = arith.constant 0 : i32
    %2 = arith.cmpi ne, %1, %c0_i32_0 : i32
    scf.if %2 {
      %cst_10 = arith.constant 0.000000e+00 : f32
      %12 = vector.broadcast %cst_10 : f32 to vector<256x128xf32>
      %c0_11 = arith.constant 0 : index
      %c0_12 = arith.constant 0 : index
      %13 = vector.load %arg7[%c0_11, %c0_12] : memref<256x128xf32, #tpu.memory_space<vmem>>, vector<256x128xf32>
      tpu.vector_store %arg7[%c0_11, %c0_12], %12 {strides = array<i32>} : memref<256x128xf32, #tpu.memory_space<vmem>>, vector<256x128xf32>,
    } else {
    }
    %c0 = arith.constant 0 : index
    %c0_1 = arith.constant 0 : index
    %3 = vector.load %arg7[%c0, %c0_1] : memref<256x128xf32, #tpu.memory_space<vmem>>, vector<256x128xf32>
    %c0_2 = arith.constant 0 : index
    %c0_3 = arith.constant 0 : index
    %4 = vector.load %arg3[%c0_2, %c0_3] : memref<256x128xf32, #tpu.memory_space<vmem>>, vector<256x128xf32>
    %c0_4 = arith.constant 0 : index
    %c0_5 = arith.constant 0 : index
    %5 = vector.load %arg4[%c0_4, %c0_5] : memref<128x128xf32, #tpu.memory_space<vmem>>, vector<128x128xf32>
    %cst = arith.constant dense<0.000000e+00> : vector<256x128xf32>
    %6 = tpu.matmul %4, %5, %cst {dimension_numbers = #tpu.dot_dimension_numbers<[1], [0], [0], [1], [0, 0, 1, 1], [], []>} : vector<256x128xf32>, vector<128x128xf32>, vector<256x128xf32> -> vector<256x128xf32>
    %7 = arith.addf %3, %6 : vector<256x128xf32>
    %c0_6 = arith.constant 0 : index
    %c0_7 = arith.constant 0 : index
    %8 = vector.load %arg7[%c0_6, %c0_7] : memref<256x128xf32, #tpu.memory_space<vmem>>, vector<256x128xf32>
    tpu.vector_store %arg7[%c0_6, %c0_7], %7 {strides = array<i32>} : memref<256x128xf32, #tpu.memory_space<vmem>>, vector<256x128xf32>,
    %c0_i32_8 = arith.constant 0 : i32
    %9 = arith.cmpi eq, %arg2, %c0_i32_8 : i32
    %10 = arith.extui %9 : i1 to i32
    %c0_i32_9 = arith.constant 0 : i32
    %11 = arith.cmpi ne, %10, %c0_i32_9 : i32
    scf.if %11 {
      %c0_10 = arith.constant 0 : index
      %c0_11 = arith.constant 0 : index
      %12 = vector.load %arg7[%c0_10, %c0_11] : memref<256x128xf32, #tpu.memory_space<vmem>>, vector<256x128xf32>
      %c0_12 = arith.constant 0 : index
      %c0_13 = arith.constant 0 : index
      %13 = vector.load %arg5[%c0_12, %c0_13] : memref<1x128xf32, #tpu.memory_space<vmem>>, vector<1x128xf32>
      %14 = vector.broadcast %13 : vector<1x128xf32> to vector<256x128xf32>
      %15 = arith.addf %12, %14 : vector<256x128xf32>
      %16 = arith.negf %15 : vector<256x128xf32>
      %17 = math.exp %16 : vector<256x128xf32>
      %cst_14 = arith.constant 1.000000e+00 : f32
      %18 = vector.broadcast %cst_14 : f32 to vector<256x128xf32>
      %19 = arith.addf %18, %17 : vector<256x128xf32>
      %20 = arith.divf %18, %19 : vector<256x128xf32>
      %21 = arith.mulf %15, %20 : vector<256x128xf32>
      %c0_15 = arith.constant 0 : index
      %c0_16 = arith.constant 0 : index
      %22 = vector.load %arg6[%c0_15, %c0_16] : memref<256x128xf32, #tpu.memory_space<vmem>>, vector<256x128xf32>
      tpu.vector_store %arg6[%c0_15, %c0_16], %21 {strides = array<i32>} : memref<256x128xf32, #tpu.memory_space<vmem>>, vector<256x128xf32>,
    } else {
    }
    return
  }
  func.func @transform_0(%arg0: i32, %arg1: i32, %arg2: i32) -> (i32, i32) {
    %c0_i32 = arith.constant 0 : i32
    return %arg0, %arg2 : i32, i32
  }
  func.func @transform_1(%arg0: i32, %arg1: i32, %arg2: i32) -> (i32, i32) {
    %c0_i32 = arith.constant 0 : i32
    return %arg2, %arg1 : i32, i32
  }
  func.func @transform_2(%arg0: i32, %arg1: i32, %arg2: i32) -> (i32, i32) {
    %c0_i32 = arith.constant 0 : i32
    %c0_i32_0 = arith.constant 0 : i32
    return %c0_i32, %arg1 : i32, i32
  }
  func.func @transform_3(%arg0: i32, %arg1: i32, %arg2: i32) -> (i32, i32) {
    %c0_i32 = arith.constant 0 : i32
    return %arg0, %arg1 : i32, i32
  }
}

</mosaic_0001>

<bundles_post_ra>
// kernel: conv_block_forward.1
= control target key start
LH: loop header
LB: loop body
LE: loop exit
PB: predicated region body
PF: predicated region fallthrough
CT: control target
= control target key end

     0   :  { %s1697_s12 = smov 0   ;;  %s1699_s13 = smov 0   ;;  %s2473_s0 = inlined_call_operand.vmem [shape: f32[512,128], index: 0, kind: input, shape index: {}]   ;;  %s2474_s1 = inlined_call_operand.vmem [shape: f32[128,128], index: 1, kind: input, shape index: {}]   ;;  %s2475_s2 = inlined_call_operand.vmem [shape: f32[1,128], index: 2, kind: input, shape index: {}]   ;;  %s2476_s3 = inlined_call_operand.vmem [shape: f32[512,128], index: 3, kind: output, shape index: {}]  }
   0x1   :  { %s1701_s14 = smov 0  }
   0x2 LB: > { %s32_s15 = sadd.s32 1, %s1671_s13  ;;  %p1412_p0 = scmp.ge.s32.totalorder %s1675_s14, 1  ;;  %s1675_s14 = sphi %s1701_s14, %s13_s14   ;;  %s1671_s13 = sphi %s1699_s13, %s2528_s13   ;;  %s1667_s12 = sphi %s1697_s12, %s2527_s12  }
   0x3   : > { %p34_p1 = scmp.ge.s32.totalorder %s32_s15, 2  ;;  %p188_p2 = scmp.lt.s32.totalorder %s1675_s14, 3 }
   0x5   : > { %s2530_s15 = smov (%p34_p1, %s32_s15), 0  ;;  %p189_p3 = pnand %p1412_p0, %p188_p2 }
   0x6   : > { %s1413_s5 = sshll.u32 (!%p189_p3), %s1667_s12, 5 }
   0x7   : > { %192 = sbr.rel (%p189_p3) target bundleno = 333 (0x14d), region = 32  ;;  %p230_p4 = scmp.lt.s32.totalorder (!%p189_p3), %s1413_s5, 63 }
   0xc   : > { %v374_v0 = vld [vmem:[%s2474_s1 + $0x78] sm:$0xff]  ;;  %v373_v1 = vld [vmem:[%s2474_s1 + $0x70] sm:$0xff]  ;;  %v372_v2 = vld [vmem:[%s2474_s1 + $0x68] sm:$0xff]  ;;  %s2532_s5 = smov (!%p230_p4, %s1413_s5), 63 }
   0xd   : > { %375 = vmatpush.msra.mxu0 %v374_v0  ;;  %1451 = vmatpush.msra.mxu1 %v374_v0  ;;  %v371_v3 = vld [vmem:[%s2474_s1 + $0x60] sm:$0xff]  ;;  %v370_v4 = vld [vmem:[%s2474_s1 + $0x58] sm:$0xff]  ;;  %v369_v5 = vld [vmem:[%s2474_s1 + $0x50] sm:$0xff]  ;;  %s1414_s21 = sshll.u32 %s2532_s5, 3 }
   0xe   : > { %1452 = vmatpush.msra.mxu2 %v374_v0  ;;  %1453 = vmatpush.msra.mxu3 %v374_v0  ;;  %v368_v6 = vld [vmem:[%s2474_s1 + $0x48] sm:$0xff]  ;;  %v367_v7 = vld [vmem:[%s2474_s1 + $0x40] sm:$0xff]  ;;  %v366_v8 = vld [vmem:[%s2474_s1 + $0x38] sm:$0xff]  ;;  %s1771_s26 = scalar_lea.vmem %s2473_s0, %s1414_s21  ;;  %s1911_s7 = scalar_lea.vmem %s2476_s3, %s1414_s21 }
   0xf   : > { %376 = vmatpush.msra.mxu0 %v373_v1  ;;  %1454 = vmatpush.msra.mxu1 %v373_v1  ;;  %v365_v9 = vld [vmem:[%s2474_s1 + $0x30] sm:$0xff]  ;;  %v364_v10 = vld [vmem:[%s2474_s1 + $0x28] sm:$0xff]  ;;  %v363_v11 = vld [vmem:[%s2474_s1 + $0x20] sm:$0xff] }
  0x10   : > { %1455 = vmatpush.msra.mxu2 %v373_v1  ;;  %1456 = vmatpush.msra.mxu3 %v373_v1  ;;  %v362_v12 = vld [vmem:[%s2474_s1 + $0x18] sm:$0xff]  ;;  %v361_v13 = vld [vmem:[%s2474_s1 + $0x10] sm:$0xff]  ;;  %v360_v14 = vld [vmem:[%s2474_s1 + $0x8] sm:$0xff] }
  0x11   : > { %377 = vmatpush.msra.mxu0 %v372_v2  ;;  %1457 = vmatpush.msra.mxu1 %v372_v2  ;;  %v359_v15 = vld [vmem:[%s2474_s1] sm:$0xff]  ;;  %v328_v20 = vld [vmem:[%s1771_s26 + $0x8] sm:$0xff]  ;;  %v329_v24 = vld [vmem:[%s1771_s26 + $0x10] sm:$0xff] }
  0x12   : > { %1458 = vmatpush.msra.mxu2 %v372_v2  ;;  %1459 = vmatpush.msra.mxu3 %v372_v2  ;;  %v327_v16 = vld [vmem:[%s1771_s26] sm:$0xff]  ;;  %v336_v21 = vld [vmem:[%s1771_s26 + $0x48] sm:$0xff]  ;;  %v337_v25 = vld [vmem:[%s1771_s26 + $0x50] sm:$0xff] }
  0x13   : > { %378 = vmatpush.msra.mxu0 %v371_v3  ;;  %1460 = vmatpush.msra.mxu1 %v371_v3  ;;  %v335_v17 = vld [vmem:[%s1771_s26 + $0x40] sm:$0xff]  ;;  %v344_v22 = vld [vmem:[%s1771_s26 + $0x88] sm:$0xff]  ;;  %v345_v26 = vld [vmem:[%s1771_s26 + $0x90] sm:$0xff] }
  0x14   : > { %1461 = vmatpush.msra.mxu2 %v371_v3  ;;  %1462 = vmatpush.msra.mxu3 %v371_v3  ;;  %v343_v18 = vld [vmem:[%s1771_s26 + $0x80] sm:$0xff]  ;;  %v352_v23 = vld [vmem:[%s1771_s26 + $0xc8] sm:$0xff]  ;;  %v353_v27 = vld [vmem:[%s1771_s26 + $0xd0] sm:$0xff] }
  0x15   : > { %379 = vmatpush.msra.mxu0 %v370_v4  ;;  %1463 = vmatpush.msra.mxu1 %v370_v4  ;;  %v351_v19 = vld [vmem:[%s1771_s26 + $0xc0] sm:$0xff]  ;;  %v330_v28 = vld [vmem:[%s1771_s26 + $0x18] sm:$0xff]  ;;  %v332_v36 = vld [vmem:[%s1771_s26 + $0x28] sm:$0xff] }
  0x16   : > { %1464 = vmatpush.msra.mxu2 %v370_v4  ;;  %1465 = vmatpush.msra.mxu3 %v370_v4  ;;  %v338_v29 = vld [vmem:[%s1771_s26 + $0x58] sm:$0xff]  ;;  %v331_v32 = vld [vmem:[%s1771_s26 + $0x20] sm:$0xff]  ;;  %v340_v37 = vld [vmem:[%s1771_s26 + $0x68] sm:$0xff] }
  0x17   : > { %380 = vmatpush.msra.mxu0 %v369_v5  ;;  %1466 = vmatpush.msra.mxu1 %v369_v5  ;;  %v346_v30 = vld [vmem:[%s1771_s26 + $0x98] sm:$0xff]  ;;  %v339_v33 = vld [vmem:[%s1771_s26 + $0x60] sm:$0xff]  ;;  %v348_v38 = vld [vmem:[%s1771_s26 + $0xa8] sm:$0xff] }
  0x18   : > { %1467 = vmatpush.msra.mxu2 %v369_v5  ;;  %1468 = vmatpush.msra.mxu3 %v369_v5  ;;  %v354_v31 = vld [vmem:[%s1771_s26 + $0xd8] sm:$0xff]  ;;  %v347_v34 = vld [vmem:[%s1771_s26 + $0xa0] sm:$0xff]  ;;  %v356_v39 = vld [vmem:[%s1771_s26 + $0xe8] sm:$0xff] }
  0x19   : > { %381 = vmatpush.msra.mxu0 %v368_v6  ;;  %1469 = vmatpush.msra.mxu1 %v368_v6  ;;  %v355_v35 = vld [vmem:[%s1771_s26 + $0xe0] sm:$0xff]  ;;  %v333_v40 = vld [vmem:[%s1771_s26 + $0x30] sm:$0xff]  ;;  %v334_v44 = vld [vmem:[%s1771_s26 + $0x38] sm:$0xff] }
  0x1a   : > { %1470 = vmatpush.msra.mxu2 %v368_v6  ;;  %1471 = vmatpush.msra.mxu3 %v368_v6  ;;  %v341_v41 = vld [vmem:[%s1771_s26 + $0x70] sm:$0xff]  ;;  %v342_v45 = vld [vmem:[%s1771_s26 + $0x78] sm:$0xff]  ;;  %v1811_v48 = vld [vmem:[%s2475_s2] ss:$0 sm:$0xff] }
  0x1b   : > { %382 = vmatpush.msra.mxu0 %v367_v7  ;;  %1472 = vmatpush.msra.mxu1 %v367_v7  ;;  %v349_v42 = vld [vmem:[%s1771_s26 + $0xb0] sm:$0xff]  ;;  %v350_v46 = vld [vmem:[%s1771_s26 + $0xb8] sm:$0xff] }
  0x1c   : > { %1473 = vmatpush.msra.mxu2 %v367_v7  ;;  %1474 = vmatpush.msra.mxu3 %v367_v7  ;;  %v357_v43 = vld [vmem:[%s1771_s26 + $0xf0] sm:$0xff]  ;;  %v358_v47 = vld [vmem:[%s1771_s26 + $0xf8] sm:$0xff] }
  0x1d   : > { %383 = vmatpush.msra.mxu0 %v366_v8  ;;  %1475 = vmatpush.msra.mxu1 %v366_v8 }
  0x1e   : > { %1476 = vmatpush.msra.mxu2 %v366_v8  ;;  %1477 = vmatpush.msra.mxu3 %v366_v8 }
  0x1f   : > { %384 = vmatpush.msra.mxu0 %v365_v9  ;;  %1478 = vmatpush.msra.mxu1 %v365_v9 }
  0x20   : > { %1479 = vmatpush.msra.mxu2 %v365_v9  ;;  %1480 = vmatpush.msra.mxu3 %v365_v9 }
  0x21   : > { %385 = vmatpush.msra.mxu0 %v364_v10  ;;  %1481 = vmatpush.msra.mxu1 %v364_v10 }
  0x22   : > { %1482 = vmatpush.msra.mxu2 %v364_v10  ;;  %1483 = vmatpush.msra.mxu3 %v364_v10 }
  0x23   : > { %386 = vmatpush.msra.mxu0 %v363_v11  ;;  %1484 = vmatpush.msra.mxu1 %v363_v11 }
  0x24   : > { %1485 = vmatpush.msra.mxu2 %v363_v11  ;;  %1486 = vmatpush.msra.mxu3 %v363_v11 }
  0x25   : > { %387 = vmatpush.msra.mxu0 %v362_v12  ;;  %1487 = vmatpush.msra.mxu1 %v362_v12 }
  0x26   : > { %1488 = vmatpush.msra.mxu2 %v362_v12  ;;  %1489 = vmatpush.msra.mxu3 %v362_v12 }
  0x27   : > { %388 = vmatpush.msra.mxu0 %v361_v13  ;;  %1490 = vmatpush.msra.mxu1 %v361_v13 }
  0x28   : > { %1491 = vmatpush.msra.mxu2 %v361_v13  ;;  %1492 = vmatpush.msra.mxu3 %v361_v13 }
  0x29   : > { %389 = vmatpush.msra.mxu0 %v360_v14  ;;  %1493 = vmatpush.msra.mxu1 %v360_v14 }
  0x2a   : > { %1494 = vmatpush.msra.mxu2 %v360_v14  ;;  %1495 = vmatpush.msra.mxu3 %v360_v14 }
  0x2b   : > { %390 = vmatpush.msra.mxu0 %v359_v15  ;;  %1496 = vmatpush.msra.mxu1 %v359_v15 }
  0x2c   : > { %1497 = vmatpush.msra.mxu2 %v359_v15  ;;  %1498 = vmatpush.msra.mxu3 %v359_v15 }
  0x2d   : > { %391 = vmatmul.f32.vlgmr.msra.gmra.mxu0 %v327_v16  ;;  %415 = vmatmul.f32.vlgmr.msra.gmra.mxu1 %v335_v17 }
  0x2e   : > { %439 = vmatmul.f32.vlgmr.msra.gmra.mxu2 %v343_v18  ;;  %463 = vmatmul.f32.vlgmr.msra.gmra.mxu3 %v351_v19 }
  0x35   : > { %394 = vmatmul.f32.gmra.mxu0 %v328_v20  ;;  %418 = vmatmul.f32.gmra.mxu1 %v336_v21 }
  0x36   : > { %442 = vmatmul.f32.gmra.mxu2 %v344_v22  ;;  %466 = vmatmul.f32.gmra.mxu3 %v352_v23 }
  0x3d   : > { %397 = vmatmul.f32.gmra.mxu0 %v329_v24  ;;  %421 = vmatmul.f32.gmra.mxu1 %v337_v25 }
  0x3e   : > { %445 = vmatmul.f32.gmra.mxu2 %v345_v26  ;;  %469 = vmatmul.f32.gmra.mxu3 %v353_v27 }
  0x45   : > { %400 = vmatmul.f32.gmra.mxu0 %v330_v28  ;;  %424 = vmatmul.f32.gmra.mxu1 %v338_v29 }
  0x46   : > { %448 = vmatmul.f32.gmra.mxu2 %v346_v30  ;;  %472 = vmatmul.f32.gmra.mxu3 %v354_v31 }
  0x4d   : > { %403 = vmatmul.f32.gmra.mxu0 %v331_v32  ;;  %427 = vmatmul.f32.gmra.mxu1 %v339_v33 }
  0x4e   : > { %451 = vmatmul.f32.gmra.mxu2 %v347_v34  ;;  %475 = vmatmul.f32.gmra.mxu3 %v355_v35 }
  0x55   : > { %406 = vmatmul.f32.gmra.mxu0 %v332_v36  ;;  %430 = vmatmul.f32.gmra.mxu1 %v340_v37 }
  0x56   : > { %454 = vmatmul.f32.gmra.mxu2 %v348_v38  ;;  %478 = vmatmul.f32.gmra.mxu3 %v356_v39 }
  0x5d   : > { %409 = vmatmul.f32.gmra.mxu0 %v333_v40  ;;  %433 = vmatmul.f32.gmra.mxu1 %v341_v41 }
  0x5e   : > { %457 = vmatmul.f32.gmra.mxu2 %v349_v42  ;;  %481 = vmatmul.f32.gmra.mxu3 %v357_v43 }
  0x65   : > { %412 = vmatmul.f32.gmra.mxu0 %v334_v44  ;;  %436 = vmatmul.f32.gmra.mxu1 %v342_v45 }
  0x66   : > { %460 = vmatmul.f32.gmra.mxu2 %v350_v46  ;;  %484 = vmatmul.f32.gmra.mxu3 %v358_v47 }
  0xaa   : > { %v392_v49 = vpop.f32.mrf.mxu0  ;;  %v416_v50 = vpop.f32.mrf.mxu1 }
  0xab   : > { %v1814_v51 = vadd.f32 %v1811_v48, %v392_v49  ;;  %v1817_v52 = vadd.f32 %v1811_v48, %v416_v50 }
  0xad   : > { %v1417_v53 = vmul.f32 -1.442695, %v1814_v51  ;;  %v1425_v54 = vmul.f32 -1.442695, %v1817_v52 }
  0xaf   : > { %1524 = vpow2.f32 %v1417_v53 }
  0xb0   : > { %1526 = vpow2.f32 %v1425_v54 }
  0xb1   : > { %v440_v55 = vpop.f32.mrf.mxu2  ;;  %v464_v56 = vpop.f32.mrf.mxu3 }
  0xb2   : > { %v1822_v57 = vadd.f32 %v1811_v48, %v440_v55  ;;  %v1825_v58 = vadd.f32 %v1811_v48, %v464_v56  ;;  %v395_v59 = vpop.f32.mrf.mxu0  ;;  %v419_v60 = vpop.f32.mrf.mxu1 }
  0xb3   : > { %v1828_v61 = vadd.f32 %v1811_v48, %v395_v59  ;;  %v1831_v62 = vadd.f32 %v1811_v48, %v419_v60 }
  0xb4   : > { %v1433_v63 = vmul.f32 -1.442695, %v1822_v57  ;;  %v1441_v0 = vmul.f32 -1.442695, %v1825_v58 }
  0xb5   : > { %v1525_v1 = vpop.eup %1524  ;;  %v1418_v4 = vmul.f32 -1.442695, %v1828_v61  ;;  %v1426_v6 = vmul.f32 -1.442695, %v1831_v62 }
  0xb6   : > { %v1527_v2 = vpop.eup %1526  ;;  %v1835_v3 = vadd.f32 1.0, %v1525_v1  ;;  %1528 = vpow2.f32 %v1433_v63 }
  0xb7   : > { %v1838_v5 = vadd.f32 1.0, %v1527_v2  ;;  %1530 = vpow2.f32 %v1441_v0 }
  0xb8   : > { %1532 = vrcp.f32 %v1835_v3  ;;  %v760_v11 = vand.u32 2147483647, %v1835_v3  ;;  %v762_v12 = vand.u32 2147483648, %v1835_v3  ;;  %vm756_vm0 = vweird.f32 %v1835_v3 }
  0xb9   : > { %1534 = vrcp.f32 %v1838_v5  ;;  %v443_v7 = vpop.f32.mrf.mxu2  ;;  %v467_v8 = vpop.f32.mrf.mxu3  ;;  %v880_v14 = vand.u32 2147483647, %v1838_v5  ;;  %v882_v15 = vand.u32 2147483648, %v1838_v5  ;;  %vm876_vm1 = vweird.f32 %v1838_v5 }
  0xba   : > { %1536 = vpow2.f32 %v1418_v4  ;;  %v1844_v9 = vadd.f32 %v1811_v48, %v443_v7  ;;  %v398_v10 = vpop.f32.mrf.mxu0  ;;  %v1852_v17 = vadd.f32 %v1811_v48, %v467_v8  ;;  %v422_v23 = vpop.f32.mrf.mxu1  ;;  %vm1864_vm2 = vcmp.eq.f32.partialorder %v760_v11, 8.507059e+37 }
  0xbb   : > { %1538 = vpow2.f32 %v1426_v6  ;;  %v1857_v20 = vadd.f32 %v1811_v48, %v398_v10  ;;  %v763_v27 = vor.u32 1.1754944e-38, %v762_v12  ;;  %vm1870_vm3 = vcmp.eq.f32.partialorder %v880_v14, 8.507059e+37 }
  0xbc   : > { %v1529_v13 = vpop.eup %1528  ;;  %v1434_v16 = vmul.f32 -1.442695, %v1844_v9  ;;  %v883_v31 = vor.u32 1.1754944e-38, %v882_v15  ;;  %v1442_v32 = vmul.f32 -1.442695, %v1852_v17  ;;  %v1878_v36 = vadd.f32 %v1811_v48, %v422_v23 }
  0xbd   : > { %v1531_v18 = vpop.eup %1530  ;;  %v1854_v19 = vadd.f32 1.0, %v1529_v13  ;;  %v1419_v35 = vmul.f32 -1.442695, %v1857_v20 }
  0xbe   : > { %v1533_v21 = vpop.eup %1532  ;;  %v1861_v22 = vadd.f32 1.0, %v1531_v18  ;;  %v1891_v49 = vmul.f32 -1.442695, %v1878_v36 }
  0xbf   : > { %v1535_v24 = vpop.eup %1534  ;;  %v752_v25 = vmul.f32 %v1533_v21, %v1835_v3  ;;  %1540 = vrcp.f32 %v1854_v19  ;;  %vm757_vm4 = vweird.f32 %v1533_v21  ;;  %v1000_v38 = vand.u32 2147483647, %v1854_v19 }
  0xc0   : > { %v1537_v28 = vpop.eup %1536  ;;  %v872_v29 = vmul.f32 %v1535_v24, %v1838_v5  ;;  %1542 = vpow2.f32 %v1434_v16  ;;  %v1002_v39 = vand.u32 2147483648, %v1854_v19  ;;  %v1122_v41 = vand.u32 2147483648, %v1861_v22  ;;  %vm758_vm7 = vmor %vm756_vm0, %vm757_vm4 }
  0xc1   : > { %v1539_v33 = vpop.eup %1538  ;;  %v753_v34 = vsub.f32 1.0, %v752_v25  ;;  %1544 = vrcp.f32 %v1861_v22  ;;  %v1883_v42 = vadd.f32 1.0, %v1537_v28  ;;  %vm877_vm5 = vweird.f32 %v1535_v24  ;;  %v446_v56 = vpop.f32.mrf.mxu2 }
  0xc2   : > { %v873_v37 = vsub.f32 1.0, %v872_v29  ;;  %v1885_v43 = vadd.f32 1.0, %v1539_v33  ;;  %v1120_v45 = vand.u32 2147483647, %v1861_v22  ;;  %1546 = vpow2.f32 %v1442_v32  ;;  %vm878_vm10 = vmor %vm876_vm1, %vm877_vm5 }
  0xc3   : > { %v754_v40 = vmul.f32 %v1533_v21, %v753_v34  ;;  %vm996_vm6 = vweird.f32 %v1854_v19  ;;  %1548 = vrcp.f32 %v1883_v42  ;;  %vm1897_vm8 = vcmp.eq.f32.partialorder %v1000_v38, 8.507059e+37 }
  0xc4   : > { %v874_v44 = vmul.f32 %v1535_v24, %v873_v37  ;;  %vm1116_vm9 = vweird.f32 %v1861_v22  ;;  %v1003_v63 = vor.u32 1.1754944e-38, %v1002_v39  ;;  %v1123_v0 = vor.u32 1.1754944e-38, %v1122_v41 }
  0xc5   : > { %v1541_v46 = vpop.eup %1540  ;;  %v755_v47 = vadd.f32 %v1533_v21, %v754_v40  ;;  %1550 = vrcp.f32 %v1885_v43  ;;  %vm1916_vm11 = vcmp.eq.f32.partialorder %v1120_v45, 8.507059e+37  ;;  %v775_v8 = vand.u32 2147483647, %v1883_v42 }
  0xc6   : > { %v1543_v50 = vpop.eup %1542  ;;  %v875_v53 = vadd.f32 %v1535_v24, %v874_v44  ;;  %v992_v54 = vmul.f32 %v1541_v46, %v1854_v19  ;;  %v1925_v10 = vadd.f32 %v1811_v48, %v446_v56  ;;  %vm997_vm12 = vweird.f32 %v1541_v46  ;;  %v470_v44 = vpop.f32.mrf.mxu3 }
  0xc7   : > { %v1545_v59 = vpop.eup %1544  ;;  %v759_v60 = vsel %vm758_vm7, %v1533_v21, %v755_v47  ;;  %vm771_vm13 = vweird.f32 %v1883_v42  ;;  %v1931_v16 = vadd.f32 1.0, %v1543_v50  ;;  %1552 = vpow2.f32 %v1419_v35  ;;  %vm998_vm15 = vmor %vm996_vm6, %vm997_vm12 }
  0xc8   : > { %v764_v1 = vsel %vm1864_vm2, %v763_v27, %v759_v60  ;;  %v879_v2 = vsel %vm878_vm10, %v1535_v24, %v875_v53  ;;  %v993_v3 = vsub.f32 1.0, %v992_v54  ;;  %v1112_v4 = vmul.f32 %v1545_v59, %v1861_v22  ;;  %v1547_v11 = vpop.eup %1546 }
  0xc9   : > { %v1231_v6 = vmul.f32 %v764_v1, %v1814_v51  ;;  %v884_v7 = vsel %vm1870_vm3, %v883_v31, %v879_v2  ;;  %v1549_v15 = vpop.eup %1548  ;;  %v777_v51 = vand.u32 2147483648, %v1883_v42  ;;  %vm1117_vm14 = vweird.f32 %v1545_v59 }
  0xca   : > { %v1239_v12 = vmul.f32 %v884_v7, %v1817_v52  ;;  %v994_v13 = vmul.f32 %v1541_v46, %v993_v3  ;;  %v1113_v14 = vsub.f32 1.0, %v1112_v4  ;;  %v767_v23 = vmul.f32 %v1549_v15, %v1883_v42  ;;  %vm1118_vm1 = vmor %vm1116_vm9, %vm1117_vm14  ;;  %v425_v7 = vpop.f32.mrf.mxu1 }
  0xcb   : > { %1263 = vst [vmem:[%s1911_s7] sm:$0xff] %v1231_v6  ;;  %v1551_v24 = vpop.eup %1550  ;;  %vm1937_vm0 = vcmp.eq.f32.partialorder %v775_v8, 8.507059e+37  ;;  %v895_v25 = vand.u32 2147483647, %v1885_v43  ;;  %1554 = vrcp.f32 %v1931_v16  ;;  %v1943_v26 = vadd.f32 1.0, %v1547_v11 }
  0xcc   : > { %1271 = vst [vmem:[%s1911_s7 + $0x40] sm:$0xff] %v1239_v12  ;;  %v995_v18 = vadd.f32 %v1541_v46, %v994_v13  ;;  %v1114_v21 = vmul.f32 %v1545_v59, %v1113_v14  ;;  %v768_v29 = vsub.f32 1.0, %v767_v23  ;;  %v887_v30 = vmul.f32 %v1551_v24, %v1885_v43 }
  0xcd   : > { %vm772_vm2 = vweird.f32 %v1549_v15  ;;  %vm891_vm3 = vweird.f32 %v1885_v43  ;;  %v897_v31 = vand.u32 2147483648, %v1885_v43  ;;  %v1553_v37 = vpop.eup %1552  ;;  %v778_v39 = vor.u32 1.1754944e-38, %v777_v51  ;;  %v449_v51 = vpop.f32.mrf.mxu2 }
  0xce   : > { %v999_v27 = vsel %vm998_vm15, %v1541_v46, %v995_v18  ;;  %v1115_v28 = vadd.f32 %v1545_v59, %v1114_v21  ;;  %v769_v34 = vmul.f32 %v1549_v15, %v768_v29  ;;  %v888_v35 = vsub.f32 1.0, %v887_v30  ;;  %vm773_vm6 = vmor %vm771_vm13, %vm772_vm2 }
  0xcf   : > { %v1004_v19 = vsel %vm1897_vm8, %v1003_v63, %v999_v27  ;;  %vm1955_vm4 = vcmp.eq.f32.partialorder %v895_v25, 8.507059e+37  ;;  %1556 = vrcp.f32 %v1943_v26  ;;  %vm892_vm5 = vweird.f32 %v1551_v24 }
  0xd0   : > { %v1247_v32 = vmul.f32 %v1004_v19, %v1822_v57  ;;  %v1119_v33 = vsel %vm1118_vm1, %v1545_v59, %v1115_v28  ;;  %v770_v41 = vadd.f32 %v1549_v15, %v769_v34  ;;  %v889_v57 = vmul.f32 %v1551_v24, %v888_v35  ;;  %vm893_vm7 = vmor %vm891_vm3, %vm892_vm5  ;;  %v473_v28 = vpop.f32.mrf.mxu3 }
  0xd1   : > { %v1124_v38 = vsel %vm1916_vm11, %v1123_v0, %v1119_v33  ;;  %v1555_v45 = vpop.eup %1554  ;;  %v1015_v46 = vand.u32 2147483647, %v1931_v16  ;;  %v1017_v47 = vand.u32 2147483648, %v1931_v16  ;;  %v1967_v50 = vadd.f32 1.0, %v1553_v37  ;;  %v401_v0 = vpop.f32.mrf.mxu0 }
  0xd2   : > { %1279 = vst [vmem:[%s1911_s7 + $0x80] sm:$0xff] %v1247_v32  ;;  %v1255_v22 = vmul.f32 %v1124_v38, %v1825_v58  ;;  %1558 = vpow2.f32 %v1891_v49  ;;  %v774_v53 = vsel %vm773_vm6, %v1549_v15, %v770_v41  ;;  %v890_v58 = vadd.f32 %v1551_v24, %v889_v57 }
  0xd3   : > { %v898_v54 = vor.u32 1.1754944e-38, %v897_v31  ;;  %v1007_v55 = vmul.f32 %v1555_v45, %v1931_v16  ;;  %v779_v56 = vsel %vm1937_vm0, %v778_v39, %v774_v53  ;;  %vm1011_vm8 = vweird.f32 %v1931_v16 }
  0xd4   : > { %1287 = vst [vmem:[%s1911_s7 + $0xc0] sm:$0xff] %v1255_v22  ;;  %v1135_v42 = vand.u32 2147483647, %v1943_v26  ;;  %1560 = vrcp.f32 %v1967_v50  ;;  %v1232_v49 = vmul.f32 %v779_v56, %v1828_v61  ;;  %v894_v59 = vsel %vm893_vm7, %v1551_v24, %v890_v58 }
  0xd5   : > { %v1008_v60 = vsub.f32 1.0, %v1007_v55  ;;  %v1137_v63 = vand.u32 2147483648, %v1943_v26  ;;  %v1557_v1 = vpop.eup %1556  ;;  %v899_v2 = vsel %vm1955_vm4, %v898_v54, %v894_v59  ;;  %vm1983_vm9 = vcmp.eq.f32.partialorder %v1015_v46, 8.507059e+37 }
  0xd6   : > { %v1018_v3 = vor.u32 1.1754944e-38, %v1017_v47  ;;  %v1435_v4 = vmul.f32 -1.442695, %v1925_v10  ;;  %1264 = vst [vmem:[%s1911_s7 + $0x8] sm:$0xff] %v1232_v49  ;;  %v1240_v61 = vmul.f32 %v899_v2, %v1831_v62  ;;  %vm1012_vm10 = vweird.f32 %v1555_v45 }
  0xd7   : > { %v1009_v5 = vmul.f32 %v1555_v45, %v1008_v60  ;;  %v1127_v6 = vmul.f32 %v1557_v1, %v1943_v26  ;;  %vm1131_vm11 = vweird.f32 %v1943_v26  ;;  %vm1992_vm12 = vcmp.eq.f32.partialorder %v1135_v42, 8.507059e+37  ;;  %vm1013_vm13 = vmor %vm1011_vm8, %vm1012_vm10 }
  0xd8   : > { %v1559_v8 = vpop.eup %1558  ;;  %1562 = vpow2.f32 %v1435_v4  ;;  %v1997_v12 = vadd.f32 %v1811_v48, %v470_v44  ;;  %1272 = vst [vmem:[%s1911_s7 + $0x48] sm:$0xff] %v1240_v61  ;;  %v1138_v62 = vor.u32 1.1754944e-38, %v1137_v63  ;;  %vm786_vm14 = vweird.f32 %v1967_v50 }
  0xd9   : > { %v1010_v13 = vadd.f32 %v1555_v45, %v1009_v5  ;;  %v1128_v14 = vsub.f32 1.0, %v1127_v6  ;;  %v2000_v15 = vadd.f32 1.0, %v1559_v8  ;;  %v2008_v23 = vadd.f32 %v1811_v48, %v401_v0  ;;  %v404_v22 = vpop.f32.mrf.mxu0  ;;  %v452_v8 = vpop.f32.mrf.mxu2 }
  0xda   : > { %v1561_v18 = vpop.eup %1560  ;;  %v1443_v21 = vmul.f32 -1.442695, %v1997_v12  ;;  %v2011_v24 = vadd.f32 %v1811_v48, %v425_v7  ;;  %vm1132_vm15 = vweird.f32 %v1557_v1  ;;  %v790_v29 = vand.u32 2147483647, %v1967_v50  ;;  %v428_v7 = vpop.f32.mrf.mxu1 }
  0xdb   : > { %v1014_v52 = vsel %vm1013_vm13, %v1555_v45, %v1010_v13  ;;  %v1129_v25 = vmul.f32 %v1557_v1, %v1128_v14  ;;  %v782_v27 = vmul.f32 %v1561_v18, %v1967_v50  ;;  %1564 = vrcp.f32 %v2000_v15  ;;  %vm1133_vm0 = vmor %vm1131_vm11, %vm1132_vm15 }
  0xdc   : > { %v1019_v16 = vsel %vm1983_vm9, %v1018_v3, %v1014_v52  ;;  %v2019_v30 = vadd.f32 %v1811_v48, %v449_v51  ;;  %v792_v33 = vand.u32 2147483648, %v1967_v50  ;;  %1566 = vpow2.f32 %v1443_v21 }
  0xdd   : > { %v1248_v19 = vmul.f32 %v1019_v16, %v1844_v9  ;;  %v1130_v31 = vadd.f32 %v1557_v1, %v1129_v25  ;;  %v783_v32 = vsub.f32 1.0, %v782_v27  ;;  %v1420_v35 = vmul.f32 -1.442695, %v2008_v23 }
  0xde   : > { %v1563_v34 = vpop.eup %1562  ;;  %v1428_v37 = vmul.f32 -1.442695, %v2011_v24  ;;  %v2028_v38 = vadd.f32 %v1811_v48, %v473_v28  ;;  %vm787_vm1 = vweird.f32 %v1561_v18  ;;  %v1436_v41 = vmul.f32 -1.442695, %v2019_v30 }
  0xdf   : > { %1280 = vst [vmem:[%s1911_s7 + $0x88] sm:$0xff] %v1248_v19  ;;  %v1134_v39 = vsel %vm1133_vm0, %v1557_v1, %v1130_v31  ;;  %v784_v40 = vmul.f32 %v1561_v18, %v783_v32  ;;  %v2031_v9 = vadd.f32 1.0, %v1563_v34  ;;  %1568 = vpow2.f32 %v1420_v35  ;;  %vm788_vm2 = vmor %vm786_vm14, %vm787_vm1 }
  0xe0   : > { %v1139_v26 = vsel %vm1992_vm12, %v1138_v62, %v1134_v39  ;;  %v793_v45 = vor.u32 1.1754944e-38, %v792_v33  ;;  %v910_v47 = vand.u32 2147483647, %v2000_v15  ;;  %v1444_v53 = vmul.f32 -1.442695, %v2028_v38  ;;  %v476_v62 = vpop.f32.mrf.mxu3 }
  0xe1   : > { %v1256_v57 = vmul.f32 %v1139_v26, %v1852_v17  ;;  %v785_v44 = vadd.f32 %v1561_v18, %v784_v40  ;;  %1570 = vrcp.f32 %v2031_v9  ;;  %v1565_v46 = vpop.eup %1564  ;;  %v2043_v58 = vadd.f32 %v1811_v48, %v404_v22  ;;  %v407_v25 = vpop.f32.mrf.mxu0 }
  0xe2   : > { %1572 = vpow2.f32 %v1428_v37  ;;  %vm791_vm3 = vcmp.eq.f32.partialorder %v790_v29, 8.507059e+37  ;;  %v902_v17 = vmul.f32 %v1565_v46, %v2000_v15  ;;  %v912_v55 = vand.u32 2147483648, %v2000_v15  ;;  %v1567_v56 = vpop.eup %1566 }
  0xe3   : > { %1288 = vst [vmem:[%s1911_s7 + $0xc8] sm:$0xff] %v1256_v57  ;;  %v789_v54 = vsel %vm788_vm2, %v1561_v18, %v785_v44  ;;  %v1030_v50 = vand.u32 2147483647, %v2031_v9  ;;  %v1032_v49 = vand.u32 2147483648, %v2031_v9  ;;  %1574 = vpow2.f32 %v1436_v41 }
  0xe4   : > { %v794_v42 = vsel %vm791_vm3, %v793_v45, %v789_v54  ;;  %v903_v60 = vsub.f32 1.0, %v902_v17  ;;  %v2051_v63 = vadd.f32 1.0, %v1567_v56  ;;  %v1421_v0 = vmul.f32 -1.442695, %v2043_v58 }
  0xe5   : > { %v1233_v59 = vmul.f32 %v794_v42, %v1857_v20  ;;  %v1569_v1 = vpop.eup %1568  ;;  %vm906_vm4 = vweird.f32 %v2000_v15  ;;  %vm2055_vm5 = vcmp.eq.f32.partialorder %v910_v47, 8.507059e+37  ;;  %1576 = vpow2.f32 %v1444_v53 }
  0xe6   : > { %v904_v3 = vmul.f32 %v1565_v46, %v903_v60  ;;  %vm907_vm6 = vweird.f32 %v1565_v46  ;;  %v913_v4 = vor.u32 1.1754944e-38, %v912_v55  ;;  %1578 = vrcp.f32 %v2051_v63 }
  0xe7   : > { %v1571_v43 = vpop.eup %1570  ;;  %1265 = vst [vmem:[%s1911_s7 + $0x10] sm:$0xff] %v1233_v59  ;;  %vm1026_vm7 = vweird.f32 %v2031_v9  ;;  %vm2063_vm8 = vcmp.eq.f32.partialorder %v1030_v50, 8.507059e+37  ;;  %v2067_v6 = vadd.f32 1.0, %v1569_v1  ;;  %v1033_v13 = vor.u32 1.1754944e-38, %v1032_v49  ;;  %vm908_vm9 = vmor %vm906_vm4, %vm907_vm6 }
  0xe8   : > { %v1573_v20 = vpop.eup %1572  ;;  %v1022_v61 = vmul.f32 %v1571_v43, %v2031_v9  ;;  %v905_v11 = vadd.f32 %v1565_v46, %v904_v3  ;;  %1580 = vpow2.f32 %v1421_v0  ;;  %v1150_v21 = vand.u32 2147483647, %v2051_v63 }
  0xe9   : > { %v2069_v14 = vadd.f32 1.0, %v1573_v20  ;;  %v1575_v51 = vpop.eup %1574  ;;  %v1152_v52 = vand.u32 2147483648, %v2051_v63  ;;  %1582 = vrcp.f32 %v2067_v6  ;;  %v2079_v28 = vadd.f32 %v1811_v48, %v428_v7 }
  0xea   : > { %v1023_v18 = vsub.f32 1.0, %v1022_v61  ;;  %v909_v27 = vsel %vm908_vm9, %v1565_v46, %v905_v11  ;;  %v2082_v16 = vadd.f32 %v1811_v48, %v452_v8  ;;  %vm1027_vm10 = vweird.f32 %v1571_v43 }
  0xeb   : > { %1584 = vrcp.f32 %v2069_v14  ;;  %v1577_v29 = vpop.eup %1576  ;;  %v914_v15 = vsel %vm2055_vm5, %v913_v4, %v909_v27  ;;  %v2087_v31 = vadd.f32 %v1811_v48, %v476_v62  ;;  %vm1146_vm11 = vweird.f32 %v2051_v63  ;;  %vm1028_vm14 = vmor %vm1026_vm7, %vm1027_vm10 }
  0xec   : > { %v1024_v19 = vmul.f32 %v1571_v43, %v1023_v18  ;;  %v1579_v32 = vpop.eup %1578  ;;  %v1241_v33 = vmul.f32 %v914_v15, %v1878_v36  ;;  %v805_v34 = vand.u32 2147483647, %v2067_v6  ;;  %v2093_v35 = vadd.f32 %v1811_v48, %v407_v25 }
  0xed   : > { %v1142_v39 = vmul.f32 %v1579_v32, %v2051_v63  ;;  %vm2096_vm12 = vcmp.eq.f32.partialorder %v1150_v21, 8.507059e+37  ;;  %v1153_v22 = vor.u32 1.1754944e-38, %v1152_v52  ;;  %vm801_vm13 = vweird.f32 %v2067_v6 }
  0xee   : > { %v1025_v37 = vadd.f32 %v1571_v43, %v1024_v19  ;;  %v1581_v26 = vpop.eup %1580  ;;  %1273 = vst [vmem:[%s1911_s7 + $0x50] sm:$0xff] %v1241_v33  ;;  %v807_v36 = vand.u32 2147483648, %v2067_v6  ;;  %vm921_vm15 = vweird.f32 %v2069_v14  ;;  %v925_v41 = vand.u32 2147483647, %v2069_v14  ;;  %v431_v33 = vpop.f32.mrf.mxu1 }
  0xef   : > { %v2107_v57 = vadd.f32 1.0, %v1575_v51  ;;  %v1583_v44 = vpop.eup %1582  ;;  %v1143_v46 = vsub.f32 1.0, %v1142_v39  ;;  %v927_v47 = vand.u32 2147483648, %v2069_v14  ;;  %v2110_v53 = vadd.f32 1.0, %v1577_v29 }
  0xf0   : > { %v1029_v45 = vsel %vm1028_vm14, %v1571_v43, %v1025_v37  ;;  %vm1147_vm0 = vweird.f32 %v1579_v32  ;;  %v797_v17 = vmul.f32 %v1583_v44, %v2067_v6  ;;  %vm2115_vm1 = vcmp.eq.f32.partialorder %v805_v34, 8.507059e+37 }
  0xf1   : > { %v1585_v54 = vpop.eup %1584  ;;  %v1034_v9 = vsel %vm2063_vm8, %v1033_v13, %v1029_v45  ;;  %1586 = vrcp.f32 %v2107_v57  ;;  %v1144_v42 = vmul.f32 %v1579_v32, %v1143_v46  ;;  %v2122_v49 = vadd.f32 1.0, %v1581_v26  ;;  %vm1148_vm3 = vmor %vm1146_vm11, %vm1147_vm0  ;;  %v455_v26 = vpop.f32.mrf.mxu2 }
  0xf2   : > { %v1249_v56 = vmul.f32 %v1034_v9, %v1925_v10  ;;  %v917_v50 = vmul.f32 %v1585_v54, %v2069_v14  ;;  %v798_v59 = vsub.f32 1.0, %v797_v17  ;;  %v808_v60 = vor.u32 1.1754944e-38, %v807_v36 }
  0xf3   : > { %vm2124_vm2 = vcmp.eq.f32.partialorder %v925_v41, 8.507059e+37  ;;  %v1045_v1 = vand.u32 2147483647, %v2107_v57  ;;  %v1145_v2 = vadd.f32 %v1579_v32, %v1144_v42  ;;  %v1047_v3 = vand.u32 2147483648, %v2107_v57  ;;  %v479_v41 = vpop.f32.mrf.mxu3 }
  0xf4   : > { %1281 = vst [vmem:[%s1911_s7 + $0x90] sm:$0xff] %v1249_v56  ;;  %v918_v43 = vsub.f32 1.0, %v917_v50  ;;  %1588 = vrcp.f32 %v2110_v53  ;;  %v799_v10 = vmul.f32 %v1583_v44, %v798_v59  ;;  %vm802_vm4 = vweird.f32 %v1583_v44 }
  0xf5   : > { %v928_v4 = vor.u32 1.1754944e-38, %v927_v47  ;;  %v1429_v20 = vmul.f32 -1.442695, %v2079_v28  ;;  %v1149_v61 = vsel %vm1148_vm3, %v1579_v32, %v1145_v2  ;;  %vm922_vm5 = vweird.f32 %v1585_v54  ;;  %vm803_vm7 = vmor %vm801_vm13, %vm802_vm4 }
  0xf6   : > { %v919_v5 = vmul.f32 %v1585_v54, %v918_v43  ;;  %1590 = vrcp.f32 %v2122_v49  ;;  %v1154_v8 = vsel %vm2096_vm12, %v1153_v22, %v1149_v61  ;;  %v800_v11 = vadd.f32 %v1583_v44, %v799_v10  ;;  %vm923_vm9 = vmor %vm921_vm15, %vm922_vm5  ;;  %v410_v10 = vpop.f32.mrf.mxu0  ;;  %v434_v18 = vpop.f32.mrf.mxu1 }
  0xf7   : > { %v1587_v7 = vpop.eup %1586  ;;  %vm1041_vm6 = vweird.f32 %v2107_v57  ;;  %v1437_v63 = vmul.f32 -1.442695, %v2082_v16  ;;  %v1257_v13 = vmul.f32 %v1154_v8, %v1997_v12  ;;  %vm2145_vm8 = vcmp.eq.f32.partialorder %v1045_v1, 8.507059e+37 }
  0xf8   : > { %v920_v62 = vadd.f32 %v1585_v54, %v919_v5  ;;  %v1037_v51 = vmul.f32 %v1587_v7, %v2107_v57  ;;  %v1048_v21 = vor.u32 1.1754944e-38, %v1047_v3  ;;  %v804_v52 = vsel %vm803_vm7, %v1583_v44, %v800_v11 }
  0xf9   : > { %vm1161_vm10 = vweird.f32 %v2110_v53  ;;  %v1165_v25 = vand.u32 2147483647, %v2110_v53  ;;  %v1167_v12 = vand.u32 2147483648, %v2110_v53  ;;  %vm816_vm11 = vweird.f32 %v2122_v49  ;;  %1289 = vst [vmem:[%s1911_s7 + $0xd0] sm:$0xff] %v1257_v13 }
  0xfa   : > { %v1589_v6 = vpop.eup %1588  ;;  %v809_v27 = vsel %vm2115_vm1, %v808_v60, %v804_v52  ;;  %v924_v29 = vsel %vm923_vm9, %v1585_v54, %v920_v62  ;;  %v1038_v15 = vsub.f32 1.0, %v1037_v51  ;;  %1592 = vpow2.f32 %v1429_v20 }
  0xfb   : > { %v1234_v14 = vmul.f32 %v809_v27, %v2008_v23  ;;  %v929_v19 = vsel %vm2124_vm2, %v928_v4, %v924_v29  ;;  %vm1042_vm12 = vweird.f32 %v1587_v7  ;;  %v1157_v32 = vmul.f32 %v1589_v6, %v2110_v53 }
  0xfc   : > { %v1591_v34 = vpop.eup %1590  ;;  %v1242_v37 = vmul.f32 %v929_v19, %v2011_v24  ;;  %v1039_v39 = vmul.f32 %v1587_v7, %v1038_v15  ;;  %v820_v40 = vand.u32 2147483647, %v2122_v49  ;;  %v822_v22 = vand.u32 2147483648, %v2122_v49  ;;  %vm1043_vm14 = vmor %vm1041_vm6, %vm1042_vm12 }
  0xfd   : > { %1266 = vst [vmem:[%s1911_s7 + $0x18] sm:$0xff] %v1234_v14  ;;  %v1158_v36 = vsub.f32 1.0, %v1157_v32  ;;  %vm1162_vm13 = vweird.f32 %v1589_v6  ;;  %v812_v23 = vmul.f32 %v1591_v34, %v2122_v49  ;;  %1594 = vpow2.f32 %v1437_v63 }
  0xfe   : > { %1274 = vst [vmem:[%s1911_s7 + $0x58] sm:$0xff] %v1242_v37  ;;  %v1040_v44 = vadd.f32 %v1587_v7, %v1039_v39  ;;  %v1445_v45 = vmul.f32 -1.442695, %v2087_v31  ;;  %v1422_v46 = vmul.f32 -1.442695, %v2093_v35  ;;  %v2171_v24 = vadd.f32 %v1811_v48, %v431_v33  ;;  %vm1163_vm0 = vmor %vm1161_vm10, %vm1162_vm13 }
  0xff   : > { %v1159_v47 = vmul.f32 %v1589_v6, %v1158_v36  ;;  %v813_v54 = vsub.f32 1.0, %v812_v23  ;;  %vm817_vm15 = vweird.f32 %v1591_v34  ;;  %v2177_v9 = vadd.f32 %v1811_v48, %v455_v26 }
 0x100   : > { %v1593_v17 = vpop.eup %1592  ;;  %v1044_v55 = vsel %vm1043_vm14, %v1587_v7, %v1040_v44  ;;  %1596 = vpow2.f32 %v1445_v45  ;;  %v1430_v56 = vmul.f32 -1.442695, %v2171_v24  ;;  %v2181_v42 = vadd.f32 %v1811_v48, %v479_v41  ;;  %vm818_vm3 = vmor %vm816_vm11, %vm817_vm15 }
 0x101   : > { %v1049_v50 = vsel %vm2145_vm8, %v1048_v21, %v1044_v55  ;;  %v1160_v57 = vadd.f32 %v1589_v6, %v1159_v47  ;;  %v814_v59 = vmul.f32 %v1591_v34, %v813_v54  ;;  %v2185_v60 = vadd.f32 1.0, %v1593_v17 }
 0x102   : > { %v1250_v0 = vmul.f32 %v1049_v50, %v2019_v30  ;;  %vm1166_vm1 = vcmp.eq.f32.partialorder %v1165_v25, 8.507059e+37  ;;  %v1168_v1 = vor.u32 1.1754944e-38, %v1167_v12  ;;  %1598 = vpow2.f32 %v1422_v46 }
 0x103   : > { %v1595_v2 = vpop.eup %1594  ;;  %v1164_v43 = vsel %vm1163_vm0, %v1589_v6, %v1160_v57  ;;  %v815_v3 = vadd.f32 %v1591_v34, %v814_v59  ;;  %vm821_vm2 = vcmp.eq.f32.partialorder %v820_v40, 8.507059e+37  ;;  %1600 = vrcp.f32 %v2185_v60  ;;  %v458_v6 = vpop.f32.mrf.mxu2 }
 0x104   : > { %1282 = vst [vmem:[%s1911_s7 + $0x98] sm:$0xff] %v1250_v0  ;;  %v1169_v4 = vsel %vm1166_vm1, %v1168_v1, %v1164_v43  ;;  %v823_v30 = vor.u32 1.1754944e-38, %v822_v22  ;;  %v2196_v53 = vadd.f32 1.0, %v1595_v2  ;;  %v1438_v20 = vmul.f32 -1.442695, %v2177_v9 }
 0x105   : > { %v1258_v61 = vmul.f32 %v1169_v4, %v2028_v38  ;;  %v819_v5 = vsel %vm818_vm3, %v1591_v34, %v815_v3  ;;  %1602 = vpow2.f32 %v1430_v56  ;;  %v1446_v7 = vmul.f32 -1.442695, %v2181_v42 }
 0x106   : > { %v1597_v8 = vpop.eup %1596  ;;  %v824_v11 = vsel %vm821_vm2, %v823_v30, %v819_v5  ;;  %v940_v63 = vand.u32 2147483647, %v2185_v60  ;;  %1604 = vrcp.f32 %v2196_v53  ;;  %v2204_v49 = vadd.f32 %v1811_v48, %v410_v10 }
 0x107   : > { %1290 = vst [vmem:[%s1911_s7 + $0xd8] sm:$0xff] %v1258_v61  ;;  %v1235_v13 = vmul.f32 %v824_v11, %v2043_v58  ;;  %v942_v62 = vand.u32 2147483648, %v2185_v60  ;;  %vm936_vm4 = vweird.f32 %v2185_v60  ;;  %v2210_v51 = vadd.f32 1.0, %v1597_v8 }
 0x108   : > { %v1599_v38 = vpop.eup %1598  ;;  %1606 = vpow2.f32 %v1438_v20  ;;  %v1060_v52 = vand.u32 2147483647, %v2196_v53  ;;  %v1062_v25 = vand.u32 2147483648, %v2196_v53  ;;  %vm2218_vm5 = vcmp.eq.f32.partialorder %v940_v63, 8.507059e+37 }
 0x109   : > { %v1601_v21 = vpop.eup %1600  ;;  %1267 = vst [vmem:[%s1911_s7 + $0x20] sm:$0xff] %v1235_v13  ;;  %v2215_v12 = vadd.f32 1.0, %v1599_v38  ;;  %1608 = vpow2.f32 %v1446_v7  ;;  %v1423_v29 = vmul.f32 -1.442695, %v2204_v49  ;;  %v943_v14 = vor.u32 1.1754944e-38, %v942_v62 }
 0x10a   : > { %v932_v58 = vmul.f32 %v1601_v21, %v2185_v60  ;;  %1610 = vrcp.f32 %v2210_v51  ;;  %vm1056_vm6 = vweird.f32 %v2196_v53  ;;  %v2227_v19 = vadd.f32 %v1811_v48, %v434_v18 }
 0x10b   : > { %v1603_v15 = vpop.eup %1602  ;;  %1612 = vrcp.f32 %v2215_v12  ;;  %v1182_v34 = vand.u32 2147483648, %v2210_v51  ;;  %v2233_v39 = vadd.f32 %v1811_v48, %v458_v6  ;;  %vm2236_vm7 = vcmp.eq.f32.partialorder %v1060_v52, 8.507059e+37 }
 0x10c   : > { %v1605_v32 = vpop.eup %1604  ;;  %v933_v33 = vsub.f32 1.0, %v932_v58  ;;  %v2230_v37 = vadd.f32 1.0, %v1603_v15  ;;  %v1063_v26 = vor.u32 1.1754944e-38, %v1062_v25  ;;  %v1180_v36 = vand.u32 2147483647, %v2210_v51 }
 0x10d   : > { %v1052_v40 = vmul.f32 %v1605_v32, %v2196_v53  ;;  %v837_v23 = vand.u32 2147483648, %v2215_v12  ;;  %vm937_vm8 = vweird.f32 %v1601_v21  ;;  %v835_v45 = vand.u32 2147483647, %v2215_v12 }
 0x10e   : > { %v1607_v41 = vpop.eup %1606  ;;  %v934_v44 = vmul.f32 %v1601_v21, %v933_v33  ;;  %1614 = vrcp.f32 %v2230_v37  ;;  %vm1057_vm9 = vweird.f32 %v1605_v32  ;;  %vm1176_vm10 = vweird.f32 %v2210_v51  ;;  %vm938_vm12 = vmor %vm936_vm4, %vm937_vm8 }
 0x10f   : > { %v1609_v48 = vpop.eup %1608  ;;  %v1053_v46 = vsub.f32 1.0, %v1052_v40  ;;  %vm831_vm11 = vweird.f32 %v2215_v12  ;;  %v1183_v17 = vor.u32 1.1754944e-38, %v1182_v34  ;;  %v2246_v55 = vadd.f32 1.0, %v1607_v41  ;;  %vm1058_vm15 = vmor %vm1056_vm6, %vm1057_vm9 }
 0x110   : > { %v1611_v47 = vpop.eup %1610  ;;  %v935_v54 = vadd.f32 %v1601_v21, %v934_v44  ;;  %1616 = vpow2.f32 %v1423_v29  ;;  %vm2251_vm13 = vcmp.eq.f32.partialorder %v1180_v36, 8.507059e+37  ;;  %v838_v0 = vor.u32 1.1754944e-38, %v837_v23 }
 0x111   : > { %v1613_v56 = vpop.eup %1612  ;;  %v1054_v50 = vmul.f32 %v1605_v32, %v1053_v46  ;;  %v1172_v57 = vmul.f32 %v1611_v47, %v2210_v51  ;;  %v955_v1 = vand.u32 2147483647, %v2230_v37  ;;  %vm2257_vm14 = vcmp.eq.f32.partialorder %v835_v45, 8.507059e+37  ;;  %v482_v51 = vpop.f32.mrf.mxu3 }
 0x112   : > { %v939_v2 = vsel %vm938_vm12, %v1601_v21, %v935_v54  ;;  %v827_v43 = vmul.f32 %v1613_v56, %v2215_v12  ;;  %v957_v60 = vand.u32 2147483648, %v2230_v37  ;;  %v2262_v10 = vadd.f32 1.0, %v1609_v48  ;;  %v413_v48 = vpop.f32.mrf.mxu0  ;;  %v437_v54 = vpop.f32.mrf.mxu1 }
 0x113   : > { %v944_v4 = vsel %vm2218_vm5, %v943_v14, %v939_v2  ;;  %v1055_v30 = vadd.f32 %v1605_v32, %v1054_v50  ;;  %v1173_v20 = vsub.f32 1.0, %v1172_v57  ;;  %1618 = vrcp.f32 %v2246_v55  ;;  %v1652_v2 = vld [vmem:[%s2475_s2] ss:$0 sm:$0xff] }
 0x114   : > { %v1615_v61 = vpop.eup %1614  ;;  %v1243_v5 = vmul.f32 %v944_v4, %v2079_v28  ;;  %vm1177_vm0 = vweird.f32 %v1611_v47  ;;  %v828_v7 = vsub.f32 1.0, %v827_v43  ;;  %vm951_vm1 = vweird.f32 %v2230_v37 }
 0x115   : > { %v1059_v8 = vsel %vm1058_vm15, %v1605_v32, %v1055_v30  ;;  %v1174_v11 = vmul.f32 %v1611_v47, %v1173_v20  ;;  %v947_v63 = vmul.f32 %v1615_v61, %v2230_v37  ;;  %vm2273_vm2 = vcmp.eq.f32.partialorder %v955_v1, 8.507059e+37  ;;  %vm1178_vm4 = vmor %vm1176_vm10, %vm1177_vm0 }
 0x116   : > { %v1617_v62 = vpop.eup %1616  ;;  %1275 = vst [vmem:[%s1911_s7 + $0x60] sm:$0xff] %v1243_v5  ;;  %v1064_v28 = vsel %vm2236_vm7, %v1063_v26, %v1059_v8  ;;  %v829_v53 = vmul.f32 %v1613_v56, %v828_v7  ;;  %vm832_vm3 = vweird.f32 %v1613_v56  ;;  %v958_v38 = vor.u32 1.1754944e-38, %v957_v60 }
 0x117   : > { %v1251_v18 = vmul.f32 %v1064_v28, %v2082_v16  ;;  %v1175_v21 = vadd.f32 %v1611_v47, %v1174_v11  ;;  %v948_v52 = vsub.f32 1.0, %v947_v63  ;;  %1620 = vrcp.f32 %v2262_v10  ;;  %vm833_vm7 = vmor %vm831_vm11, %vm832_vm3 }
 0x118   : > { %v830_v25 = vadd.f32 %v1613_v56, %v829_v53  ;;  %vm952_vm5 = vweird.f32 %v1615_v61  ;;  %vm1071_vm6 = vweird.f32 %v2246_v55  ;;  %v1075_v6 = vand.u32 2147483647, %v2246_v55 }
 0x119   : > { %v1619_v58 = vpop.eup %1618  ;;  %1283 = vst [vmem:[%s1911_s7 + $0xa0] sm:$0xff] %v1251_v18  ;;  %v1179_v27 = vsel %vm1178_vm4, %v1611_v47, %v1175_v21  ;;  %v949_v16 = vmul.f32 %v1615_v61, %v948_v52  ;;  %v1077_v29 = vand.u32 2147483648, %v2246_v55  ;;  %v2291_v15 = vadd.f32 1.0, %v1617_v62  ;;  %vm953_vm8 = vmor %vm951_vm1, %vm952_vm5  ;;  %v485_v8 = vpop.f32.mrf.mxu3 }
 0x11a   : > { %v1184_v14 = vsel %vm2251_vm13, %v1183_v17, %v1179_v27  ;;  %v834_v32 = vsel %vm833_vm7, %v1613_v56, %v830_v25  ;;  %v1067_v33 = vmul.f32 %v1619_v58, %v2246_v55  ;;  %v1195_v34 = vand.u32 2147483647, %v2262_v10  ;;  %v461_v17 = vpop.f32.mrf.mxu2 }
 0x11b   : > { %v1259_v40 = vmul.f32 %v1184_v14, %v2087_v31  ;;  %v839_v12 = vsel %vm2257_vm14, %v838_v0, %v834_v32  ;;  %v950_v22 = vadd.f32 %v1615_v61, %v949_v16  ;;  %v1197_v26 = vand.u32 2147483648, %v2262_v10 }
 0x11c   : > { %v1236_v36 = vmul.f32 %v839_v12, %v2093_v35  ;;  %v1068_v23 = vsub.f32 1.0, %v1067_v33  ;;  %vm2305_vm9 = vcmp.eq.f32.partialorder %v1075_v6, 8.507059e+37  ;;  %1622 = vrcp.f32 %v2291_v15 }
 0x11d   : > { %v1621_v31 = vpop.eup %1620  ;;  %1291 = vst [vmem:[%s1911_s7 + $0xe0] sm:$0xff] %v1259_v40  ;;  %v954_v44 = vsel %vm953_vm8, %v1615_v61, %v950_v22  ;;  %vm1072_vm10 = vweird.f32 %v1619_v58  ;;  %v1078_v45 = vor.u32 1.1754944e-38, %v1077_v29  ;;  %vm1191_vm11 = vweird.f32 %v2262_v10 }
 0x11e   : > { %1268 = vst [vmem:[%s1911_s7 + $0x28] sm:$0xff] %v1236_v36  ;;  %v959_v35 = vsel %vm2273_vm2, %v958_v38, %v954_v44  ;;  %v1069_v37 = vmul.f32 %v1619_v58, %v1068_v23  ;;  %v1187_v46 = vmul.f32 %v1621_v31, %v2262_v10  ;;  %vm2316_vm12 = vcmp.eq.f32.partialorder %v1195_v34, 8.507059e+37  ;;  %vm1073_vm14 = vmor %vm1071_vm6, %vm1072_vm10 }
 0x11f   : > { %v1244_v56 = vmul.f32 %v959_v35, %v2171_v24  ;;  %vm1192_vm13 = vweird.f32 %v1621_v31  ;;  %v1198_v50 = vor.u32 1.1754944e-38, %v1197_v26  ;;  %v1431_v57 = vmul.f32 -1.442695, %v2227_v19 }
 0x120   : > { %v1070_v59 = vadd.f32 %v1619_v58, %v1069_v37  ;;  %v1188_v0 = vsub.f32 1.0, %v1187_v46  ;;  %v1439_v1 = vmul.f32 -1.442695, %v2233_v39  ;;  %v2326_v43 = vadd.f32 %v1652_v2, %v482_v51  ;;  %vm1193_vm0 = vmor %vm1191_vm11, %vm1192_vm13 }
 0x121   : > { %1276 = vst [vmem:[%s1911_s7 + $0x68] sm:$0xff] %v1244_v56  ;;  %1624 = vpow2.f32 %v1431_v57  ;;  %v2332_v24 = vadd.f32 %v1652_v2, %v413_v48  ;;  %v2334_v3 = vadd.f32 %v1652_v2, %v437_v54  ;;  %v2336_v60 = vadd.f32 %v1652_v2, %v461_v17 }
 0x122   : > { %v1623_v4 = vpop.eup %1622  ;;  %v1074_v30 = vsel %vm1073_vm14, %v1619_v58, %v1070_v59  ;;  %v1189_v20 = vmul.f32 %v1621_v31, %v1188_v0  ;;  %1626 = vpow2.f32 %v1439_v1  ;;  %v1447_v61 = vmul.f32 -1.442695, %v2326_v43 }
 0x123   : > { %v1079_v5 = vsel %vm2305_vm9, %v1078_v45, %v1074_v30  ;;  %v842_v55 = vmul.f32 %v1623_v4, %v2291_v15  ;;  %vm846_vm15 = vweird.f32 %v2291_v15  ;;  %v1424_v7 = vmul.f32 -1.442695, %v2332_v24 }
 0x124   : > { %v1252_v11 = vmul.f32 %v1079_v5, %v2177_v9  ;;  %v1190_v63 = vadd.f32 %v1621_v31, %v1189_v20  ;;  %1628 = vpow2.f32 %v1447_v61  ;;  %v1432_v13 = vmul.f32 -1.442695, %v2334_v3 }
 0x125   : > { %v843_v62 = vsub.f32 1.0, %v842_v55  ;;  %v850_v28 = vand.u32 2147483647, %v2291_v15  ;;  %1630 = vpow2.f32 %v1424_v7  ;;  %v1440_v53 = vmul.f32 -1.442695, %v2336_v60 }
 0x126   : > { %1284 = vst [vmem:[%s1911_s7 + $0xa8] sm:$0xff] %v1252_v11  ;;  %v1194_v38 = vsel %vm1193_vm0, %v1621_v31, %v1190_v63  ;;  %v852_v18 = vand.u32 2147483648, %v2291_v15  ;;  %1632 = vpow2.f32 %v1432_v13  ;;  %v2353_v9 = vadd.f32 %v1652_v2, %v485_v8 }
 0x127   : > { %v1625_v21 = vpop.eup %1624  ;;  %v1199_v52 = vsel %vm2316_vm12, %v1198_v50, %v1194_v38  ;;  %v844_v10 = vmul.f32 %v1623_v4, %v843_v62  ;;  %vm847_vm1 = vweird.f32 %v1623_v4  ;;  %1634 = vpow2.f32 %v1440_v53 }
 0x128   : > { %v1627_v25 = vpop.eup %1626  ;;  %v1260_v6 = vmul.f32 %v1199_v52, %v2181_v42  ;;  %v2358_v58 = vadd.f32 1.0, %v1625_v21  ;;  %vm848_vm2 = vmor %vm846_vm15, %vm847_vm1  ;;  %v853_v51 = vor.u32 1.1754944e-38, %v852_v18  ;;  %v1448_v14 = vmul.f32 -1.442695, %v2353_v9 }
 0x129   : > { %v845_v27 = vadd.f32 %v1623_v4, %v844_v10  ;;  %v2360_v16 = vadd.f32 1.0, %v1627_v25  ;;  %vm851_vm3 = vcmp.eq.f32.partialorder %v850_v28, 8.507059e+37 }
 0x12a   : > { %v1629_v29 = vpop.eup %1628  ;;  %1292 = vst [vmem:[%s1911_s7 + $0xe8] sm:$0xff] %v1260_v6  ;;  %1636 = vrcp.f32 %v2358_v58  ;;  %v970_v22 = vand.u32 2147483647, %v2358_v58  ;;  %v972_v36 = vand.u32 2147483648, %v2358_v58  ;;  %vm966_vm4 = vweird.f32 %v2358_v58 }
 0x12b   : > { %v1631_v32 = vpop.eup %1630  ;;  %v849_v33 = vsel %vm848_vm2, %v1623_v4, %v845_v27  ;;  %1638 = vrcp.f32 %v2360_v16  ;;  %v2370_v15 = vadd.f32 1.0, %v1629_v29  ;;  %v1090_v31 = vand.u32 2147483647, %v2360_v16 }
 0x12c   : > { %v1633_v42 = vpop.eup %1632  ;;  %v854_v34 = vsel %vm851_vm3, %v853_v51, %v849_v33  ;;  %v2372_v26 = vadd.f32 1.0, %v1631_v32  ;;  %1640 = vpow2.f32 %v1448_v14  ;;  %v1092_v44 = vand.u32 2147483648, %v2360_v16 }
 0x12d   : > { %v1635_v40 = vpop.eup %1634  ;;  %v1237_v12 = vmul.f32 %v854_v34, %v2204_v49  ;;  %1642 = vrcp.f32 %v2370_v15  ;;  %v2377_v23 = vadd.f32 1.0, %v1633_v42  ;;  %vm2386_vm5 = vcmp.eq.f32.partialorder %v970_v22, 8.507059e+37 }
 0x12e   : > { %1644 = vrcp.f32 %v2372_v26  ;;  %v2382_v49 = vadd.f32 1.0, %v1635_v40  ;;  %vm1086_vm6 = vweird.f32 %v2360_v16  ;;  %v973_v37 = vor.u32 1.1754944e-38, %v972_v36 }
 0x12f   : > { %1269 = vst [vmem:[%s1911_s7 + $0x30] sm:$0xff] %v1237_v12  ;;  %v1210_v47 = vand.u32 2147483647, %v2370_v15  ;;  %v1212_v54 = vand.u32 2147483648, %v2370_v15  ;;  %v865_v56 = vand.u32 2147483647, %v2372_v26  ;;  %1646 = vrcp.f32 %v2377_v23 }
 0x130   : > { %v1637_v41 = vpop.eup %1636  ;;  %v867_v50 = vand.u32 2147483648, %v2372_v26  ;;  %vm2397_vm7 = vcmp.eq.f32.partialorder %v1090_v31, 8.507059e+37  ;;  %v1093_v1 = vor.u32 1.1754944e-38, %v1092_v44  ;;  %1648 = vrcp.f32 %v2382_v49 }
 0x131   : > { %v1639_v45 = vpop.eup %1638  ;;  %v962_v48 = vmul.f32 %v1637_v41, %v2358_v58  ;;  %vm967_vm8 = vweird.f32 %v1637_v41  ;;  %vm1206_vm9 = vweird.f32 %v2370_v15  ;;  %vm861_vm10 = vweird.f32 %v2372_v26 }
 0x132   : > { %v1082_v46 = vmul.f32 %v1639_v45, %v2360_v16  ;;  %v1641_v57 = vpop.eup %1640  ;;  %vm1087_vm11 = vweird.f32 %v1639_v45  ;;  %vm2405_vm12 = vcmp.eq.f32.partialorder %v1210_v47, 8.507059e+37  ;;  %v1213_v55 = vor.u32 1.1754944e-38, %v1212_v54  ;;  %vm968_vm14 = vmor %vm966_vm4, %vm967_vm8 }
 0x133   : > { %v963_v17 = vsub.f32 1.0, %v962_v48  ;;  %v1643_v2 = vpop.eup %1642  ;;  %vm2410_vm13 = vcmp.eq.f32.partialorder %v865_v56, 8.507059e+37  ;;  %v868_v63 = vor.u32 1.1754944e-38, %v867_v50  ;;  %vm981_vm15 = vweird.f32 %v2377_v23  ;;  %vm1088_vm0 = vmor %vm1086_vm6, %vm1087_vm11 }
 0x134   : > { %v1083_v59 = vsub.f32 1.0, %v1082_v46  ;;  %v1645_v30 = vpop.eup %1644  ;;  %v1202_v61 = vmul.f32 %v1643_v2, %v2370_v15  ;;  %v985_v28 = vand.u32 2147483647, %v2377_v23  ;;  %vm1207_vm1 = vweird.f32 %v1643_v2 }
 0x135   : > { %v964_v4 = vmul.f32 %v1637_v41, %v963_v17  ;;  %v857_v8 = vmul.f32 %v1645_v30, %v2372_v26  ;;  %v1647_v53 = vpop.eup %1646  ;;  %v2421_v21 = vadd.f32 1.0, %v1641_v57  ;;  %vm862_vm2 = vweird.f32 %v1645_v30  ;;  %vm1208_vm3 = vmor %vm1206_vm9, %vm1207_vm1 }
 0x136   : > { %v1084_v20 = vmul.f32 %v1639_v45, %v1083_v59  ;;  %v1203_v62 = vsub.f32 1.0, %v1202_v61  ;;  %v1649_v52 = vpop.eup %1648  ;;  %v977_v58 = vmul.f32 %v1647_v53, %v2377_v23  ;;  %v987_v34 = vand.u32 2147483648, %v2377_v23  ;;  %vm863_vm4 = vmor %vm861_vm10, %vm862_vm2 }
 0x137   : > { %v965_v7 = vadd.f32 %v1637_v41, %v964_v4  ;;  %v858_v18 = vsub.f32 1.0, %v857_v8  ;;  %v1097_v33 = vmul.f32 %v1649_v52, %v2382_v49  ;;  %1650 = vrcp.f32 %v2421_v21 }
 0x138   : > { %v1085_v13 = vadd.f32 %v1639_v45, %v1084_v20  ;;  %v1204_v6 = vmul.f32 %v1643_v2, %v1203_v62  ;;  %v978_v32 = vsub.f32 1.0, %v977_v58  ;;  %vm1102_vm6 = vweird.f32 %v1649_v52 }
 0x139   : > { %v969_v38 = vsel %vm968_vm14, %v1637_v41, %v965_v7  ;;  %v859_v29 = vmul.f32 %v1645_v30, %v858_v18  ;;  %v1098_v12 = vsub.f32 1.0, %v1097_v33  ;;  %v1107_v36 = vand.u32 2147483648, %v2382_v49 }
 0x13a   : > { %v974_v10 = vsel %vm2386_vm5, %v973_v37, %v969_v38  ;;  %v1089_v25 = vsel %vm1088_vm0, %v1639_v45, %v1085_v13  ;;  %v1205_v14 = vadd.f32 %v1643_v2, %v1204_v6  ;;  %vm982_vm5 = vweird.f32 %v1647_v53 }
 0x13b   : > { %v1245_v27 = vmul.f32 %v974_v10, %v2227_v19  ;;  %v1094_v16 = vsel %vm2397_vm7, %v1093_v1, %v1089_v25  ;;  %v860_v42 = vadd.f32 %v1645_v30, %v859_v29  ;;  %v1105_v19 = vand.u32 2147483647, %v2382_v49  ;;  %vm983_vm7 = vmor %vm981_vm15, %vm982_vm5 }
 0x13c   : > { %v1253_v51 = vmul.f32 %v1094_v16, %v2233_v39  ;;  %v1209_v40 = vsel %vm1208_vm3, %v1643_v2, %v1205_v14  ;;  %v979_v39 = vmul.f32 %v1647_v53, %v978_v32  ;;  %v1099_v26 = vmul.f32 %v1649_v52, %v1098_v12 }
 0x13d   : > { %1277 = vst [vmem:[%s1911_s7 + $0x70] sm:$0xff] %v1245_v27  ;;  %v1214_v22 = vsel %vm2405_vm12, %v1213_v55, %v1209_v40  ;;  %v864_v15 = vsel %vm863_vm4, %v1645_v30, %v860_v42  ;;  %v988_v48 = vor.u32 1.1754944e-38, %v987_v34  ;;  %vm986_vm8 = vcmp.eq.f32.partialorder %v985_v28, 8.507059e+37 }
 0x13e   : > { %1285 = vst [vmem:[%s1911_s7 + $0xb0] sm:$0xff] %v1253_v51  ;;  %v1261_v41 = vmul.f32 %v1214_v22, %v2326_v43  ;;  %v869_v31 = vsel %vm2410_vm13, %v868_v63, %v864_v15  ;;  %v980_v44 = vadd.f32 %v1647_v53, %v979_v39  ;;  %v1100_v37 = vadd.f32 %v1649_v52, %v1099_v26  ;;  %v1651_v43 = vpop.eup %1650 }
 0x13f   : > { %v1238_v45 = vmul.f32 %v869_v31, %v2332_v24  ;;  %vm1101_vm9 = vweird.f32 %v2382_v49  ;;  %v1108_v47 = vor.u32 1.1754944e-38, %v1107_v36  ;;  %vm1106_vm11 = vcmp.eq.f32.partialorder %v1105_v19, 8.507059e+37 }
 0x140   : > { %1293 = vst [vmem:[%s1911_s7 + $0xf0] sm:$0xff] %v1261_v41  ;;  %v984_v35 = vsel %vm983_vm7, %v1647_v53, %v980_v44  ;;  %vm1103_vm10 = vmor %vm1101_vm9, %vm1102_vm6  ;;  %v1217_v23 = vmul.f32 %v1651_v43, %v2421_v21  ;;  %v1227_v49 = vand.u32 2147483648, %v2421_v21  ;;  %vm1222_vm12 = vweird.f32 %v1651_v43 }
 0x141   : > { %1270 = vst [vmem:[%s1911_s7 + $0x38] sm:$0xff] %v1238_v45  ;;  %v989_v46 = vsel %vm986_vm8, %v988_v48, %v984_v35  ;;  %v1104_v54 = vsel %vm1103_vm10, %v1649_v52, %v1100_v37  ;;  %v1225_v59 = vand.u32 2147483647, %v2421_v21  ;;  %vm1221_vm13 = vweird.f32 %v2421_v21 }
 0x142   : > { %v1246_v24 = vmul.f32 %v989_v46, %v2334_v3  ;;  %v1109_v17 = vsel %vm1106_vm11, %v1108_v47, %v1104_v54  ;;  %v1218_v50 = vsub.f32 1.0, %v1217_v23  ;;  %vm1223_vm14 = vmor %vm1221_vm13, %vm1222_vm12  ;;  %v1228_v3 = vor.u32 1.1754944e-38, %v1227_v49 }
 0x143   : > { %v1254_v56 = vmul.f32 %v1109_v17, %v2336_v60  ;;  %vm1226_vm15 = vcmp.eq.f32.partialorder %v1225_v59, 8.507059e+37 }
 0x144   : > { %1278 = vst [vmem:[%s1911_s7 + $0x78] sm:$0xff] %v1246_v24  ;;  %v1219_v57 = vmul.f32 %v1651_v43, %v1218_v50 }
 0x145   : > { %1286 = vst [vmem:[%s1911_s7 + $0xb8] sm:$0xff] %v1254_v56 }
 0x146   : > { %v1220_v0 = vadd.f32 %v1651_v43, %v1219_v57 }
 0x148   : > { %v1224_v1 = vsel %vm1223_vm14, %v1651_v43, %v1220_v0 }
 0x149   : > { %v1229_v2 = vsel %vm1226_vm15, %v1228_v3, %v1224_v1 }
 0x14a   : > { %v1262_v4 = vmul.f32 %v1229_v2, %v2353_v9 }
 0x14c   : > { %1294 = vst [vmem:[%s1911_s7 + $0xf8] sm:$0xff] %v1262_v4 }
 0x14d PF: > { %s13_s14 = sadd.s32 1, %s1675_s14   ;;  %s2527_s12 = smov %s1671_s13 }
 0x14e   : > { %p10_p5 = scmp.ge.s32.totalorder %s13_s14, 4   ;;  %s2528_s13 = smov %s2530_s15 }
 0x150   :  { %12 = sbr.rel (!%p10_p5) target bundleno = 2 (0x2), region = 76 }

</bundles_post_ra>
